<compile_context>
chip_gen: v5e
topology: v5e:2x2
jax: 0.10.0
libtpu: 0.0.40
codegen_flags: <defaults>
</compile_context>

<pallas_src>
import functools

import jax
import jax.numpy as jnp
from jax.experimental import pallas as pl
from jax.experimental.pallas import tpu as pltpu


# ---------------------------------------------------------------------------
# Kernel
# ---------------------------------------------------------------------------
def mc_head_kernel(x_ref, w_ref, b_ref, o_ref, acc_ref, *, h_total, mask_h):
    """x_ref: (TM, TH) VMEM, w_ref: (1, TH) VMEM, b_ref: (1, 1) SMEM,
    o_ref: (TM, 1) VMEM, acc_ref: (TM, 1) f32 VMEM scratch."""
    k = pl.program_id(1)

    @pl.when(k == 0)
    def _():
        acc_ref[...] = jnp.zeros_like(acc_ref)

    # VPU multiply + lane reduction in f32 (hides under the activation DMA).
    prod = x_ref[...].astype(jnp.float32) * w_ref[...].astype(jnp.float32)

    if mask_h:
        # Last hidden chunk is partial: stale lanes of the edge block must not
        # enter the reduction.  Valid lanes satisfy  k*TH + lane < H.
        th = x_ref.shape[-1]
        lane = jax.lax.broadcasted_iota(jnp.int32, prod.shape, 1)
        prod = jnp.where(lane < (h_total - k * th), prod, 0.0)

    acc_ref[...] += jnp.sum(prod, axis=-1, keepdims=True)

    @pl.when(k == pl.num_programs(1) - 1)
    def _():
        o_ref[...] = (acc_ref[...] + b_ref[0, 0]).astype(o_ref.dtype)


# ---------------------------------------------------------------------------
# Tiling helpers
# ---------------------------------------------------------------------------
def _round_up(x, n):
    return ((x + n - 1) // n) * n


def _round_down(x, n):
    return (x // n) * n


@functools.lru_cache(maxsize=None)
def _vmem_capacity_bytes():
    """Physical VMEM per core (64 MiB v7x, 128 MiB v5e/v6e); safe fallback."""
    try:
        info = pltpu.get_tpu_info()
        cap = getattr(info, "vmem_capacity_bytes", None)
        if cap:
            return int(cap)
    except Exception:
        pass
    return 128 * 1024 * 1024


def _choose_tiles(m_rows, hidden, itemsize, budget_bytes, sublane):
    """Pick (TM, TH) so the streamed tile fills the VMEM budget.

    Per-element accounting: 2 * itemsize for the double-buffered input DMA
    tiles plus ~8 bytes for the in-kernel f32 value / product temporaries
    (bounds the intermediate even for bf16/int8 inputs).
    """
    per_elem = 2 * itemsize + 8
    max_elems = max(budget_bytes // per_elem, sublane * 128)
    m_al = _round_up(m_rows, sublane)

    if hidden * sublane <= max_elems:
        # Whole hidden dim in one chunk; grow rows to fill the budget
        # (no artificial row cap -- the VMEM budget is the binding constraint).
        th = hidden
        tm = max(sublane, _round_down(max_elems // hidden, sublane))
        tm = min(tm, m_al)
    else:
        # Hidden dim too large for even `sublane` rows: tile H as well so TM
        # stays large and the DMA stays near roofline.
        tm = min(m_al, _round_up(512, sublane))
        th = _round_down(max_elems // tm, 128)
        if th < 128:
            th = 128
            tm = max(sublane, min(m_al, _round_down(max_elems // th, sublane)))
        th = min(th, hidden)
    return tm, th


# ---------------------------------------------------------------------------
# Wrapper
# ---------------------------------------------------------------------------
@functools.partial(jax.jit, static_argnames=("tile_rows", "tile_h"))
def multiple_choice_head(hidden_states, weight, bias, *, tile_rows=None, tile_h=None):
    """hidden_states: [B, C, H], weight: [1, H] (or [H]), bias: [1] -> [B, C]."""
    B, C, H = hidden_states.shape
    M = B * C
    x = hidden_states.reshape(M, H)
    w = weight.reshape(1, H)
    b = bias.reshape(1, 1).astype(jnp.float32)

    itemsize = x.dtype.itemsize
    # Dtype-aware sublane alignment: native packed tile is (8*4/itemsize, 128).
    sublane = 8 * max(1, 4 // itemsize)

    # Device-aware VMEM limit: ~52 MiB on v7x (64 MiB physical), 100 MiB on
    # v5e/v6e (128 MiB physical), always leaving headroom for the weight,
    # output buffers, accumulator and compiler temporaries.
    vmem_cap = _vmem_capacity_bytes()
    vmem_limit = int(min(vmem_cap - (12 << 20), 100 << 20))
    vmem_limit = max(vmem_limit, 16 << 20)

    tm_auto, th_auto = _choose_tiles(M, H, itemsize, int(vmem_limit * 0.70), sublane)
    tm = int(tile_rows) if tile_rows is not None else tm_auto
    th = int(tile_h) if tile_h is not None else th_auto

    # Validate/round user-supplied tiles ((8,128) divisibility rule).
    tm = max(sublane, _round_up(tm, sublane))
    tm = min(tm, _round_up(M, sublane))
    th = max(1, th)
    if th < H:
        th = _round_up(max(th, 128), 128)
    if th >= H:
        th = H

    num_row_tiles = pl.cdiv(M, tm)
    num_h_tiles = pl.cdiv(H, th)
    num_steps = num_row_tiles * num_h_tiles
    tile_bytes = tm * th * itemsize

    # Small tiles + many steps: a 2-deep pipeline no longer hides DMA-issue
    # latency, so triple-buffer the activation stream.
    if num_steps >= 4 and tile_bytes < (2 << 20):
        x_spec = pl.BlockSpec((tm, th), lambda i, k: (i, k),
                              pipeline_mode=pl.Buffered(3))
    else:
        x_spec = pl.BlockSpec((tm, th), lambda i, k: (i, k))

    kernel = functools.partial(mc_head_kernel, h_total=H, mask_h=(H % th != 0))

    out = pl.pallas_call(
        kernel,
        out_shape=jax.ShapeDtypeStruct((M, 1), hidden_states.dtype),
        grid=(num_row_tiles, num_h_tiles),
        in_specs=[
            x_spec,                                        # activations (streamed)
            pl.BlockSpec((1, th), lambda i, k: (0, k)),    # classifier weight chunk
            pl.BlockSpec(memory_space=pltpu.SMEM),         # bias scalar
        ],
        out_specs=pl.BlockSpec((tm, 1), lambda i, k: (i, 0)),
        scratch_shapes=[pltpu.VMEM((tm, 1), jnp.float32)],
        compiler_params=pltpu.CompilerParams(
            dimension_semantics=("parallel", "arbitrary"),
            vmem_limit_bytes=vmem_limit,
        ),
        cost_estimate=pl.CostEstimate(
            flops=2 * M * H,
            transcendentals=0,
            bytes_accessed=M * H * itemsize + H * w.dtype.itemsize + M * itemsize,
        ),
    )(x, w, b)

    return out.reshape(B, C)


# ---------------------------------------------------------------------------
# Demo / self-check
# ---------------------------------------------------------------------------
if __name__ == "__main__":
    key = jax.random.PRNGKey(0)
    k_x, k_w, k_x2, k_w2 = jax.random.split(key, 4)

    # Small shapes consistent with the module's [batch, num_choices, hidden]
    # input.  Parameter init matches the module (normal std=0.02, zero bias).
    batch_size, num_choices, hidden_size = 4, 2, 32
    hidden_states = jax.random.normal(
        k_x, (batch_size, num_choices, hidden_size), dtype=jnp.float32)
    weight = 0.02 * jax.random.normal(k_w, (1, hidden_size), dtype=jnp.float32)
    bias = jnp.zeros((1,), dtype=jnp.float32)

    logits = jax.block_until_ready(multiple_choice_head(hidden_states, weight, bias))
    ref = (hidden_states @ weight.reshape(hidden_size, 1)).squeeze(-1) + bias[0]
    assert logits.shape == (batch_size, num_choices)
    assert jnp.allclose(logits, ref, atol=1e-5, rtol=1e-5)

    # Second small check: exercises the ragged row tail (M=21, TM=8), the
    # H-chunked accumulation with lane masking (H=320, TH=128) and the
    # Buffered(3) small-tile path.
    b2_, c2_, h2_ = 3, 7, 320
    hs2 = jax.random.normal(k_x2, (b2_, c2_, h2_), dtype=jnp.float32)
    w2 = 0.02 * jax.random.normal(k_w2, (1, h2_), dtype=jnp.float32)
    bias2 = jnp.full((1,), 0.25, dtype=jnp.float32)
    logits2 = jax.block_until_ready(
        multiple_choice_head(hs2, w2, bias2, tile_rows=8, tile_h=128))
    ref2 = (hs2 @ w2.reshape(h2_, 1)).squeeze(-1) + bias2[0]
    assert logits2.shape == (b2_, c2_)
    assert jnp.allclose(logits2, ref2, atol=1e-4, rtol=1e-4)

    print("KERNEL_OK")
</pallas_src>

<mosaic_0001>
module attributes {stable_mosaic.version = 11 : i64} {
  func.func @mc_head_kernel(%arg0: i32, %arg1: i32, %arg2: memref<8x32xf32, #tpu.memory_space<vmem>>, %arg3: memref<1x32xf32, #tpu.memory_space<vmem>>, %arg4: memref<1x1xf32, #tpu.memory_space<smem>>, %arg5: memref<8x1xf32, #tpu.memory_space<vmem>>, %arg6: memref<8x1xf32, #tpu.memory_space<vmem>>) attributes {dimension_semantics = [#tpu.dimension_semantics<parallel>, #tpu.dimension_semantics<arbitrary>], iteration_bounds = array<i64: 1, 1>, scalar_prefetch = 0 : i64, scratch_operands = 1 : i64, tpu.core_type = #tpu.core_type<tc>, window_params = [{transform_indices = @transform_0, window_bounds = array<i64: 8, 32>}, {transform_indices = @transform_1, window_bounds = array<i64: 1, 32>}, {transform_indices = @transform_2, window_bounds = array<i64: 1, 1>}, {transform_indices = @transform_3, window_bounds = array<i64: 8, 1>}]} {
    %c0_i32 = arith.constant 0 : i32
    %0 = arith.cmpi eq, %arg1, %c0_i32 : i32
    %1 = arith.extui %0 : i1 to i32
    %c0_i32_0 = arith.constant 0 : i32
    %2 = arith.cmpi ne, %1, %c0_i32_0 : i32
    scf.if %2 {
      %cst_10 = arith.constant 0.000000e+00 : f32
      %15 = vector.broadcast %cst_10 : f32 to vector<8x1xf32>
      %c0_11 = arith.constant 0 : index
      %c0_12 = arith.constant 0 : index
      %16 = vector.load %arg6[%c0_11, %c0_12] : memref<8x1xf32, #tpu.memory_space<vmem>>, vector<8x1xf32>
      tpu.vector_store %arg6[%c0_11, %c0_12], %15 {strides = array<i32>} : memref<8x1xf32, #tpu.memory_space<vmem>>, vector<8x1xf32>,
    } else {
    }
    %c0 = arith.constant 0 : index
    %c0_1 = arith.constant 0 : index
    %3 = vector.load %arg2[%c0, %c0_1] : memref<8x32xf32, #tpu.memory_space<vmem>>, vector<8x32xf32>
    %c0_2 = arith.constant 0 : index
    %c0_3 = arith.constant 0 : index
    %4 = vector.load %arg3[%c0_2, %c0_3] : memref<1x32xf32, #tpu.memory_space<vmem>>, vector<1x32xf32>
    %5 = vector.broadcast %4 : vector<1x32xf32> to vector<8x32xf32>
    %6 = arith.mulf %3, %5 : vector<8x32xf32>
    %c0_4 = arith.constant 0 : index
    %c0_5 = arith.constant 0 : index
    %7 = vector.load %arg6[%c0_4, %c0_5] : memref<8x1xf32, #tpu.memory_space<vmem>>, vector<8x1xf32>
    %cst = arith.constant dense<0.000000e+00> : vector<8xf32>
    %8 = vector.multi_reduction <add>, %6, %cst [1] : vector<8x32xf32> to vector<8xf32>
    %9 = vector.shape_cast %8 : vector<8xf32> to vector<8x1xf32>
    %10 = arith.addf %7, %9 : vector<8x1xf32>
    %c0_6 = arith.constant 0 : index
    %c0_7 = arith.constant 0 : index
    %11 = vector.load %arg6[%c0_6, %c0_7] : memref<8x1xf32, #tpu.memory_space<vmem>>, vector<8x1xf32>
    tpu.vector_store %arg6[%c0_6, %c0_7], %10 {strides = array<i32>} : memref<8x1xf32, #tpu.memory_space<vmem>>, vector<8x1xf32>,
    %c0_i32_8 = arith.constant 0 : i32
    %12 = arith.cmpi eq, %arg1, %c0_i32_8 : i32
    %13 = arith.extui %12 : i1 to i32
    %c0_i32_9 = arith.constant 0 : i32
    %14 = arith.cmpi ne, %13, %c0_i32_9 : i32
    scf.if %14 {
      %c0_10 = arith.constant 0 : index
      %c0_11 = arith.constant 0 : index
      %15 = vector.load %arg6[%c0_10, %c0_11] : memref<8x1xf32, #tpu.memory_space<vmem>>, vector<8x1xf32>
      %c0_12 = arith.constant 0 : index
      %c0_13 = arith.constant 0 : index
      %16 = memref.load %arg4[%c0_12, %c0_13] : memref<1x1xf32, #tpu.memory_space<smem>>
      %17 = vector.broadcast %16 : f32 to vector<8x1xf32>
      %18 = arith.addf %15, %17 : vector<8x1xf32>
      %c0_14 = arith.constant 0 : index
      %c0_15 = arith.constant 0 : index
      %19 = vector.load %arg5[%c0_14, %c0_15] : memref<8x1xf32, #tpu.memory_space<vmem>>, vector<8x1xf32>
      tpu.vector_store %arg5[%c0_14, %c0_15], %18 {strides = array<i32>} : memref<8x1xf32, #tpu.memory_space<vmem>>, vector<8x1xf32>,
    } else {
    }
    return
  }
  func.func @transform_0(%arg0: i32, %arg1: i32) -> (i32, i32) {
    %c0_i32 = arith.constant 0 : i32
    return %arg0, %arg1 : i32, i32
  }
  func.func @transform_1(%arg0: i32, %arg1: i32) -> (i32, i32) {
    %c0_i32 = arith.constant 0 : i32
    %c0_i32_0 = arith.constant 0 : i32
    return %c0_i32, %arg1 : i32, i32
  }
  func.func @transform_2(%arg0: i32, %arg1: i32) -> (i32, i32) {
    %c0_i32 = arith.constant 0 : i32
    %c0_i32_0 = arith.constant 0 : i32
    %c0_i32_1 = arith.constant 0 : i32
    return %c0_i32, %c0_i32_0 : i32, i32
  }
  func.func @transform_3(%arg0: i32, %arg1: i32) -> (i32, i32) {
    %c0_i32 = arith.constant 0 : i32
    %c0_i32_0 = arith.constant 0 : i32
    return %arg0, %c0_i32 : i32, i32
  }
}

</mosaic_0001>

<bundles_post_ra>
// kernel: multiple_choice_head.1
= control target key start
LH: loop header
LB: loop body
LE: loop exit
PB: predicated region body
PF: predicated region fallthrough
CT: control target
= control target key end

     0   :  { %9 = vsyncpa [#allocation5], 0  ;;  %s91_s15 = smov [#allocation4]   ;;  %s128_s0 = inlined_call_operand.hbm [shape: f32[8,32], index: 0, kind: input, shape index: {}]   ;;  %s129_s1 = inlined_call_operand.vmem [shape: f32[1,32], index: 1, kind: input, shape index: {}]   ;;  %s130_s2 = inlined_call_operand.<no memory space> [shape: f32[1,1], index: 2, kind: input, shape index: {}]   ;;  %s131_s3 = inlined_call_operand.vmem [shape: f32[8,1], index: 3, kind: output, shape index: {}]  }
   0x1   :  { %s15_s14 = sshll.u32 %s128_s0, 4  ;;  %s17_s16 = sshll.u32 %s91_s15, 4  ;;  %s16_s14 = int_to_ptr.hbm [resolvable:$true] %s15_s14  ;;  %s18_s16 = int_to_ptr.vmem [resolvable:$true] %s17_s16 }
   0x2   :  { %20 = dma.hbm_to_vmem [thread:$0]  %s16_s14, 128, %s18_s16, [#allocation5]  }
   0x3   :  { %89 = dma.done.wait [#allocation5], 128  }
   0x4   :  { %90 = vsyncadd [#allocation5], 4294967168  ;;  %vm33_vm0 = vcmask 7168   ;;  %v92_v0 = vmov 0.0   ;;  %v35_v1 = vld [vmem:[#allocation4] sm:$0xff]  ;;  %vm42_vm1 = vcmask 261120   ;;  %v54_v8 = vstv %s130_s2 }
   0x5   :  { %34 = vst.msk [vmem:[#allocation2] sm:$0xff] %vm33_vm0, %v92_v0  ;;  %v64_v2 = vld [vmem:[%s129_s1] ss:$0 sm:$0xff] }
   0x6   :  { %v40_v3 = vmul.f32 %v64_v2, %v35_v1 }
   0x8   :  { %v43_v4 = vsel %vm42_vm1, %v40_v3, 0.0 }
   0x9   :  { %44 = vadd.xlane.f32.xlu0 %v43_v4 }
   0xc   :  { %v41_v5 = vld [vmem:[#allocation2] sm:$0xff] }
  0x7c   :  { %v45_v6 = vpop.xlane.xlu0 %44 }
  0x7d   :  { %v46_v7 = vadd.f32 %v45_v6, %v41_v5 }
  0x7f   :  { %48 = vst.msk [vmem:[#allocation2] sm:$0xff] %vm33_vm0, %v46_v7 }
  0x86   :  { %v52_v9 = vld [vmem:[#allocation2] sm:$0xff] }
  0x87   :  { %v55_v10 = vadd.f32 %v54_v8, %v52_v9 }
  0x89   :  { %56 = vst.msk [vmem:[%s131_s3] sm:$0xff] %vm33_vm0, %v55_v10 }
  0x8a   :  { %61 = vsyncpa [#allocation5], 1 }

</bundles_post_ra>
